<compile_context>
chip_gen: v7x
topology: tpu7x:2x2x1
jax: 0.10.0
libtpu: 0.0.40
codegen_flags: <defaults>
</compile_context>

<pallas_src>
import numpy as np
import jax
import jax.numpy as jnp
from jax import lax
from jax.experimental import pallas as pl
from jax.experimental.pallas import tpu as pltpu

# Problem sizes implied by the module.
N_AGENT = 8          # args.nagent
D_MODEL = 64         # GraphConv d_model
ACTION_SIZE = 4      # action_size
NATOMS = 8           # args.natoms
_AN = ACTION_SIZE * NATOMS   # 32
_LANE = 128                  # TPU lane width / tile column size

# Tile indices inside the packed weight slab (128 rows, 7 * 128 cols).
# Each 128x128 tile: rows 0:64 = weights, row 64 = bias, remaining rows zero.
_T_Q, _T_K, _T_V, _T_OLA, _T_FUSED, _T_QN, _T_SEG = range(7)


def _graph_qnet1_kernel(act_ref, w_ref, out_ref):
    f32 = jnp.float32

    # Activation slab: [ z (0:64) | 1 (64) | 0 (65:128) | adj (128:136) | 0 ].
    z_aug = act_ref[:, 0:_LANE].astype(jnp.bfloat16)        # (8, 128)
    adj = act_ref[:, _LANE:_LANE + N_AGENT]                 # (8, 8) f32

    def wblk(t):                                            # tile-aligned view
        c0 = t * _LANE
        return w_ref[:, c0:c0 + _LANE]                      # (128, 128) bf16

    # --- attention: Q is pre-scaled by 1/sqrt(D); biases ride the ones column ---
    q = jnp.dot(z_aug, wblk(_T_Q), preferred_element_type=f32)   # (8, 128)
    k = jnp.dot(z_aug, wblk(_T_K), preferred_element_type=f32)
    v = jnp.dot(z_aug, wblk(_T_V), preferred_element_type=f32)   # cols 64: zero

    # q @ k^T without materializing the transpose (zero-padded cols contribute 0).
    scores = lax.dot_general(q, k, (((1,), (1,)), ((), ())),
                             preferred_element_type=f32)          # (8, 8)
    scores = jnp.where(adj > 0, scores, f32(-1e9))
    m = jnp.max(scores, axis=-1, keepdims=True)
    e = jnp.exp(scores - m)
    attn = e * pl.reciprocal(jnp.sum(e, axis=-1, keepdims=True), approx=True)

    ctx = jnp.dot(attn, v, preferred_element_type=f32)            # (8, 128)

    # --- GraphConv with Wo folded into the second half of o_linear ---
    # h1 = relu(z @ wol_a + ctx @ (wo @ wol_b) + (bol + bo @ wol_b)); col 64 == 1
    # (ones pass-through baked into the OLA tile) so QNet's bias folds in too.
    h1 = jnp.maximum(
        jnp.dot(z_aug, wblk(_T_OLA), preferred_element_type=f32)
        + jnp.dot(ctx.astype(jnp.bfloat16), wblk(_T_FUSED),
                  preferred_element_type=f32),
        0.0)                                                      # (8, 128)

    # --- QNet: linear -> per-action softmax (segments of NATOMS lanes) -> clamp ---
    logits = jnp.dot(h1.astype(jnp.bfloat16), wblk(_T_QN),
                     preferred_element_type=f32)                  # (8, 128)
    row_max = jnp.max(logits, axis=-1, keepdims=True)             # valid shift
    e2 = jnp.exp(logits - row_max)
    # Per-segment sums via one block-diagonal MXU matmul (full 128-wide pattern
    # so the padded logit columns normalize harmlessly instead of dividing by 0).
    seg_sum = jnp.dot(e2.astype(jnp.bfloat16), wblk(_T_SEG),
                      preferred_element_type=f32)
    p = jnp.maximum(e2 / seg_sum, 1e-4)                           # exact divide

    # Single lane-dense output slab: tile 0 = qdist(+junk), tile 1 = attn(+zeros).
    out_ref[:, 0:_LANE] = p
    out_ref[:, _LANE:2 * _LANE] = jnp.concatenate(
        [attn, jnp.zeros((N_AGENT, _LANE - N_AGENT), f32)], axis=1)


def _linear_init(key, fan_in, fan_out):
    """Deterministic nn.Linear-style init: U(-1/sqrt(fan_in), 1/sqrt(fan_in))."""
    kw, kb = jax.random.split(key)
    bound = 1.0 / jnp.sqrt(jnp.float32(fan_in))
    w = jax.random.uniform(kw, (fan_in, fan_out), jnp.float32, -bound, bound)
    b = jax.random.uniform(kb, (1, fan_out), jnp.float32, -bound, bound)
    return w, b


def make_params(key):
    keys = jax.random.split(key, 6)
    wq, bq = _linear_init(keys[0], D_MODEL, D_MODEL)
    wk, bk = _linear_init(keys[1], D_MODEL, D_MODEL)
    wv, bv = _linear_init(keys[2], D_MODEL, D_MODEL)
    wo, bo = _linear_init(keys[3], D_MODEL, D_MODEL)
    wol, bol = _linear_init(keys[4], 2 * D_MODEL, D_MODEL)           # GraphConv.o_linear
    wqn, bqn = _linear_init(keys[5], D_MODEL, ACTION_SIZE * NATOMS)   # QNet.fc_1
    return dict(wq=wq, bq=bq, wk=wk, bk=bk, wv=wv, bv=bv, wo=wo, bo=bo,
                wol=wol, bol=bol, wqn=wqn, bqn=bqn)


def pack_weights(params):
    """One-time host-side packing of all parameters into one bf16 slab (128, 896)."""
    p = {k: np.asarray(v, np.float32) for k, v in params.items()}
    scale = np.float32(1.0 / np.sqrt(D_MODEL))
    wol_a = p['wol'][:D_MODEL]          # half acting on x_in
    wol_b = p['wol'][D_MODEL:]          # half acting on the attention output
    w_fused = p['wo'] @ wol_b                       # (64, 64)
    b_fused = p['bol'] + p['bo'] @ wol_b            # (1, 64)

    slab = np.zeros((_LANE, 7 * _LANE), np.float32)

    def put(tile, w, b=None):
        c0 = tile * _LANE
        slab[0:D_MODEL, c0:c0 + w.shape[1]] = w
        if b is not None:
            slab[D_MODEL, c0:c0 + b.shape[-1]] = np.ravel(b)

    put(_T_Q, p['wq'] * scale, p['bq'] * scale)     # attention scale folded in
    put(_T_K, p['wk'], p['bk'])
    put(_T_V, p['wv'], p['bv'])
    put(_T_OLA, wol_a, b_fused)
    slab[D_MODEL, _T_OLA * _LANE + D_MODEL] = 1.0   # ones pass-through for QNet bias
    put(_T_FUSED, w_fused)
    put(_T_QN, p['wqn'], p['bqn'])
    # Block-diagonal segment-sum operator for the per-action softmax.
    idx = np.arange(_LANE)
    slab[:, _T_SEG * _LANE:(_T_SEG + 1) * _LANE] = (
        idx[:, None] // NATOMS == idx[None, :] // NATOMS).astype(np.float32)
    return jnp.asarray(slab, dtype=jnp.bfloat16)


@jax.jit
def graph_qnet1_forward(z, adj, w_slab):
    """z: (1, N, D) f32, adj: (N, N) f32, w_slab: packed bf16 weights."""
    z2d = z[0]  # GraphConv squeezes the size-1 batch dim
    # One (8, 256) activation slab: [z | 1 | 0 pad | adj | 0 pad] (adj tile-aligned).
    act = jnp.concatenate([
        z2d,
        jnp.ones((N_AGENT, 1), jnp.float32),
        jnp.zeros((N_AGENT, _LANE - D_MODEL - 1), jnp.float32),
        adj,
        jnp.zeros((N_AGENT, _LANE - N_AGENT), jnp.float32),
    ], axis=1)

    vmem = pl.BlockSpec(memory_space=pltpu.MemorySpace.VMEM)
    out = pl.pallas_call(
        _graph_qnet1_kernel,
        out_shape=jax.ShapeDtypeStruct((N_AGENT, 2 * _LANE), jnp.float32),
        in_specs=[vmem, vmem],
        out_specs=vmem,
        cost_estimate=pl.CostEstimate(
            flops=1_900_000, transcendentals=1_500, bytes_accessed=250_000),
    )(act, w_slab)

    q_values = out[:, 0:_AN].reshape(1, N_AGENT, ACTION_SIZE, NATOMS)
    dist1 = out[:, _LANE:_LANE + N_AGENT].reshape(1, N_AGENT, N_AGENT)
    return q_values, dist1, adj


def reference_forward(z, adj, params):
    """Pure-JAX f32 reference of the assumed GraphQNet1 forward (for validation)."""
    z2d = z[0]
    scale = 1.0 / jnp.sqrt(jnp.float32(D_MODEL))
    q = z2d @ params['wq'] + params['bq']
    k = z2d @ params['wk'] + params['bk']
    v = z2d @ params['wv'] + params['bv']
    scores = jnp.where(adj > 0, (q @ k.T) * scale, -1e9)
    attn = jax.nn.softmax(scores, axis=-1)
    att_out = (attn @ v) @ params['wo'] + params['bo']
    h1 = jax.nn.relu(jnp.concatenate([z2d, att_out], axis=-1) @ params['wol']
                     + params['bol'])
    logits = h1 @ params['wqn'] + params['bqn']
    qd = jax.nn.softmax(logits.reshape(N_AGENT, ACTION_SIZE, NATOMS), axis=-1)
    qd = jnp.maximum(qd, 1e-4)
    return qd.reshape(1, N_AGENT, ACTION_SIZE, NATOMS), attn.reshape(1, N_AGENT, N_AGENT)


if __name__ == "__main__":
    key = jax.random.PRNGKey(0)
    k_param, k_z, k_adj = jax.random.split(key, 3)

    params = make_params(k_param)
    w_slab = pack_weights(params)     # packed ONCE, outside the jitted forward

    # z: encoded agent states (batch=1, nagent, d_model)
    z = jax.random.normal(k_z, (1, N_AGENT, D_MODEL), jnp.float32)
    # adj: binary adjacency; diagonal always connected so every softmax row is valid.
    adj = (jax.random.uniform(k_adj, (N_AGENT, N_AGENT)) > 0.5).astype(jnp.float32)
    adj = jnp.maximum(adj, jnp.eye(N_AGENT, dtype=jnp.float32))

    q_values, dist1, adj_out = graph_qnet1_forward(z, adj, w_slab)
    jax.block_until_ready((q_values, dist1, adj_out))

    assert q_values.shape == (1, N_AGENT, ACTION_SIZE, NATOMS)
    assert dist1.shape == (1, N_AGENT, N_AGENT)
    # per-(agent, action) distribution sums to ~1 (exact divide; clamp adds <4e-3)
    assert bool(jnp.all(jnp.abs(jnp.sum(q_values, axis=-1) - 1.0) < 1e-2))

    # Pure-JAX f32 reference check (bf16 weights + approx reciprocal -> loose tol).
    q_ref, d_ref = reference_forward(z, adj, params)
    assert bool(jnp.all(jnp.abs(q_values - q_ref) < 5e-2))
    assert bool(jnp.all(jnp.abs(dist1 - d_ref) < 5e-2))

    print("KERNEL_OK")
</pallas_src>

<mosaic_0001>
module attributes {stable_mosaic.version = 11 : i64} {
  func.func @_graph_qnet1_kernel(%arg0: memref<8x256xf32, #tpu.memory_space<vmem>>, %arg1: memref<128x896xbf16, #tpu.memory_space<vmem>>, %arg2: memref<8x256xf32, #tpu.memory_space<vmem>>) attributes {dimension_semantics = [], scalar_prefetch = 0 : i64, scratch_operands = 0 : i64, tpu.core_type = #tpu.core_type<tc>} {
    %c0 = arith.constant 0 : index
    %c0_0 = arith.constant 0 : index
    %0 = vector.load %arg0[%c0, %c0_0] : memref<8x256xf32, #tpu.memory_space<vmem>>, vector<8x128xf32>
    %1 = arith.truncf %0 : vector<8x128xf32> to vector<8x128xbf16>
    %c0_1 = arith.constant 0 : index
    %c128 = arith.constant 128 : index
    %2 = vector.load %arg0[%c0_1, %c128] : memref<8x256xf32, #tpu.memory_space<vmem>>, vector<8x8xf32>
    %c0_2 = arith.constant 0 : index
    %c0_3 = arith.constant 0 : index
    %3 = vector.load %arg1[%c0_2, %c0_3] : memref<128x896xbf16, #tpu.memory_space<vmem>>, vector<128x128xbf16>
    %cst = arith.constant dense<0.000000e+00> : vector<8x128xf32>
    %4 = tpu.matmul %1, %3, %cst {dimension_numbers = #tpu.dot_dimension_numbers<[1], [0], [0], [1], [0, 0, 1, 1], [], []>} : vector<8x128xbf16>, vector<128x128xbf16>, vector<8x128xf32> -> vector<8x128xf32>
    %c0_4 = arith.constant 0 : index
    %c128_5 = arith.constant 128 : index
    %5 = vector.load %arg1[%c0_4, %c128_5] : memref<128x896xbf16, #tpu.memory_space<vmem>>, vector<128x128xbf16>
    %cst_6 = arith.constant dense<0.000000e+00> : vector<8x128xf32>
    %6 = tpu.matmul %1, %5, %cst_6 {dimension_numbers = #tpu.dot_dimension_numbers<[1], [0], [0], [1], [0, 0, 1, 1], [], []>} : vector<8x128xbf16>, vector<128x128xbf16>, vector<8x128xf32> -> vector<8x128xf32>
    %c0_7 = arith.constant 0 : index
    %c256 = arith.constant 256 : index
    %7 = vector.load %arg1[%c0_7, %c256] : memref<128x896xbf16, #tpu.memory_space<vmem>>, vector<128x128xbf16>
    %cst_8 = arith.constant dense<0.000000e+00> : vector<8x128xf32>
    %8 = tpu.matmul %1, %7, %cst_8 {dimension_numbers = #tpu.dot_dimension_numbers<[1], [0], [0], [1], [0, 0, 1, 1], [], []>} : vector<8x128xbf16>, vector<128x128xbf16>, vector<8x128xf32> -> vector<8x128xf32>
    %cst_9 = arith.constant dense<0.000000e+00> : vector<8x8xf32>
    %9 = tpu.matmul %4, %6, %cst_9 {dimension_numbers = #tpu.dot_dimension_numbers<[1], [1], [0], [0], [0, 0, 1, 0], [], []>} : vector<8x128xf32>, vector<8x128xf32>, vector<8x8xf32> -> vector<8x8xf32>
    %cst_10 = arith.constant 0.000000e+00 : f32
    %10 = vector.broadcast %cst_10 : f32 to vector<8x8xf32>
    %11 = arith.cmpf ogt, %2, %10 : vector<8x8xf32>
    %cst_11 = arith.constant -1.000000e+09 : f32
    %12 = vector.broadcast %cst_11 : f32 to vector<8x8xf32>
    %13 = arith.select %11, %9, %12 : vector<8x8xi1>, vector<8x8xf32>
    %cst_12 = arith.constant dense<0xFF800000> : vector<8xf32>
    %14 = vector.multi_reduction <maximumf>, %13, %cst_12 [1] : vector<8x8xf32> to vector<8xf32>
    %15 = vector.shape_cast %14 : vector<8xf32> to vector<8x1xf32>
    %16 = vector.broadcast %15 : vector<8x1xf32> to vector<8x8xf32>
    %17 = arith.subf %13, %16 : vector<8x8xf32>
    %18 = math.exp %17 : vector<8x8xf32>
    %cst_13 = arith.constant dense<0.000000e+00> : vector<8xf32>
    %19 = vector.multi_reduction <add>, %18, %cst_13 [1] : vector<8x8xf32> to vector<8xf32>
    %20 = vector.shape_cast %19 : vector<8xf32> to vector<8x1xf32>
    %21 = tpu.reciprocal %20 {approx = true} : vector<8x1xf32> -> vector<8x1xf32>
    %22 = vector.broadcast %21 : vector<8x1xf32> to vector<8x8xf32>
    %23 = arith.mulf %18, %22 : vector<8x8xf32>
    %cst_14 = arith.constant dense<0.000000e+00> : vector<8x128xf32>
    %24 = tpu.matmul %23, %8, %cst_14 {dimension_numbers = #tpu.dot_dimension_numbers<[1], [0], [0], [1], [0, 0, 1, 1], [], []>} : vector<8x8xf32>, vector<8x128xf32>, vector<8x128xf32> -> vector<8x128xf32>
    %c0_15 = arith.constant 0 : index
    %c384 = arith.constant 384 : index
    %25 = vector.load %arg1[%c0_15, %c384] : memref<128x896xbf16, #tpu.memory_space<vmem>>, vector<128x128xbf16>
    %cst_16 = arith.constant dense<0.000000e+00> : vector<8x128xf32>
    %26 = tpu.matmul %1, %25, %cst_16 {dimension_numbers = #tpu.dot_dimension_numbers<[1], [0], [0], [1], [0, 0, 1, 1], [], []>} : vector<8x128xbf16>, vector<128x128xbf16>, vector<8x128xf32> -> vector<8x128xf32>
    %27 = arith.truncf %24 : vector<8x128xf32> to vector<8x128xbf16>
    %c0_17 = arith.constant 0 : index
    %c512 = arith.constant 512 : index
    %28 = vector.load %arg1[%c0_17, %c512] : memref<128x896xbf16, #tpu.memory_space<vmem>>, vector<128x128xbf16>
    %cst_18 = arith.constant dense<0.000000e+00> : vector<8x128xf32>
    %29 = tpu.matmul %27, %28, %cst_18 {dimension_numbers = #tpu.dot_dimension_numbers<[1], [0], [0], [1], [0, 0, 1, 1], [], []>} : vector<8x128xbf16>, vector<128x128xbf16>, vector<8x128xf32> -> vector<8x128xf32>
    %30 = arith.addf %26, %29 : vector<8x128xf32>
    %cst_19 = arith.constant 0.000000e+00 : f32
    %31 = vector.broadcast %cst_19 : f32 to vector<8x128xf32>
    %32 = arith.maximumf %30, %31 : vector<8x128xf32>
    %33 = arith.truncf %32 : vector<8x128xf32> to vector<8x128xbf16>
    %c0_20 = arith.constant 0 : index
    %c640 = arith.constant 640 : index
    %34 = vector.load %arg1[%c0_20, %c640] : memref<128x896xbf16, #tpu.memory_space<vmem>>, vector<128x128xbf16>
    %cst_21 = arith.constant dense<0.000000e+00> : vector<8x128xf32>
    %35 = tpu.matmul %33, %34, %cst_21 {dimension_numbers = #tpu.dot_dimension_numbers<[1], [0], [0], [1], [0, 0, 1, 1], [], []>} : vector<8x128xbf16>, vector<128x128xbf16>, vector<8x128xf32> -> vector<8x128xf32>
    %cst_22 = arith.constant dense<0xFF800000> : vector<8xf32>
    %36 = vector.multi_reduction <maximumf>, %35, %cst_22 [1] : vector<8x128xf32> to vector<8xf32>
    %37 = vector.shape_cast %36 : vector<8xf32> to vector<8x1xf32>
    %38 = vector.broadcast %37 : vector<8x1xf32> to vector<8x128xf32>
    %39 = arith.subf %35, %38 : vector<8x128xf32>
    %40 = math.exp %39 : vector<8x128xf32>
    %41 = arith.truncf %40 : vector<8x128xf32> to vector<8x128xbf16>
    %c0_23 = arith.constant 0 : index
    %c768 = arith.constant 768 : index
    %42 = vector.load %arg1[%c0_23, %c768] : memref<128x896xbf16, #tpu.memory_space<vmem>>, vector<128x128xbf16>
    %cst_24 = arith.constant dense<0.000000e+00> : vector<8x128xf32>
    %43 = tpu.matmul %41, %42, %cst_24 {dimension_numbers = #tpu.dot_dimension_numbers<[1], [0], [0], [1], [0, 0, 1, 1], [], []>} : vector<8x128xbf16>, vector<128x128xbf16>, vector<8x128xf32> -> vector<8x128xf32>
    %44 = arith.divf %40, %43 : vector<8x128xf32>
    %cst_25 = arith.constant 9.99999974E-5 : f32
    %45 = vector.broadcast %cst_25 : f32 to vector<8x128xf32>
    %46 = arith.maximumf %44, %45 : vector<8x128xf32>
    %c0_26 = arith.constant 0 : index
    %c0_27 = arith.constant 0 : index
    %47 = vector.load %arg2[%c0_26, %c0_27] : memref<8x256xf32, #tpu.memory_space<vmem>>, vector<8x128xf32>
    tpu.vector_store %arg2[%c0_26, %c0_27], %46 {strides = array<i32>} : memref<8x256xf32, #tpu.memory_space<vmem>>, vector<8x128xf32>,
    %cst_28 = arith.constant 0.000000e+00 : f32
    %48 = vector.broadcast %cst_28 : f32 to vector<8x120xf32>
    %49 = tpu.concatenate %23, %48 in 1 : vector<8x8xf32>, vector<8x120xf32> -> vector<8x128xf32>
    %c0_29 = arith.constant 0 : index
    %c128_30 = arith.constant 128 : index
    %50 = vector.load %arg2[%c0_29, %c128_30] : memref<8x256xf32, #tpu.memory_space<vmem>>, vector<8x128xf32>
    tpu.vector_store %arg2[%c0_29, %c128_30], %49 {strides = array<i32>} : memref<8x256xf32, #tpu.memory_space<vmem>>, vector<8x128xf32>,
    return
  }
}

</mosaic_0001>

<bundles_post_ra>
// kernel: graph_qnet1_forward.1
= control target key start
LH: loop header
LB: loop body
LE: loop exit
PB: predicated region body
PF: predicated region fallthrough
CT: control target
= control target key end

     0   :  { %7 = vsyncpa [#allocation3], 0  ;;  %s1305_s9 = smov [#allocation2]   ;;  %s1435_s0 = inlined_call_operand.vmem [shape: f32[8,256], index: 0, kind: input, shape index: {}]   ;;  %s1436_s1 = inlined_call_operand.hbm [shape: bf16[128,896], index: 1, kind: input, shape index: {}]   ;;  %s1437_s2 = inlined_call_operand.vmem [shape: f32[8,256], index: 2, kind: output, shape index: {}]  }
   0x1   :  { %s15_s10 = sshll.u32 %s1305_s9, 4  ;;  %s1281_s13 = scalar_lea.hbm %s1436_s1, 7168  ;;  %s16_s10 = int_to_ptr.vmem [resolvable:$true] %s15_s10 }
   0x2   :  { %p1282_p0 = scmp.ne.s32.totalorder %s1436_s1, %s1281_s13  ;;  %p1285_p1 = scmp.lt.u32.totalorder %s1281_s13, %s1436_s1 }
   0x4   :  { %p1287_p2 = pnand %p1285_p1, %p1282_p0 }
   0x6   :  { %1290 = shalt.err (!%p1287_p2)
}
   0x7   :  { %s1291_s18 = scalar_lea.vmem %s16_s10, 7168  ;;  %p1296_p4 = scmp.lt.s32.totalorder %s16_s10, %s16_s10 }
   0x8   :  { %p1292_p3 = scmp.ne.s32.totalorder %s16_s10, %s1291_s18  ;;  %p1297_p5 = scmp.lt.s32.totalorder %s1291_s18, %s1291_s18 }
   0xa   :  { %p1298_p6 = por %p1297_p5, %p1296_p4 }
   0xc   :  { %p1299_p7 = pnand %p1298_p6, %p1292_p3 }
   0xe   :  { %1302 = shalt.err (!%p1299_p7)
}
   0xf   :  { %s1306_s19 = smov 448   ;;  %s1307_s20 = smov 28  }
  0x10   :  { %21 = dma.hbm_to_vmem [thread:$0]  %s1436_s1, 7168, %s16_s10, [#allocation3], %s1306_s19, %s1306_s19, %s1307_s20  }
  0x11   :  { %1303 = dma.done.wait [#allocation3], 7168  }
  0x12   :  { %1304 = vsyncadd [#allocation3], 4294960128  ;;  %v1308_v0 = vmov 0.0   ;;  %vm1309_vm0 = vmmov 0   ;;  %v1217_v1 = vld [vmem:[#allocation2 + $0x4] ss:$28 sps:$4 sm:$0xff]  }
  0x13   :  { %1078 = vmatprep.subr.bf16.mxu1 %v1308_v0  ;;  %1058 = vmatprep.subr.bf16.mxu0 %v1308_v0  ;;  %v1218_v2 = vld [vmem:[#allocation2] ss:$28 sps:$4 sm:$0xff]   ;;  %v1220_v4 = vld [vmem:[#allocation2 + $0x38] ss:$28 sps:$4 sm:$0xff]   ;;  %v1222_v6 = vld [vmem:[#allocation2 + $0x70] ss:$28 sps:$4 sm:$0xff]  }
  0x14   :  { %1094 = vmatprep.mubr.msk.bf16.mxu1 %vm1309_vm0, %v1308_v0  ;;  %1074 = vmatprep.mubr.msk.bf16.mxu0 %vm1309_vm0, %v1308_v0  ;;  %v1219_v3 = vld [vmem:[#allocation2 + $0x3c] ss:$28 sps:$4 sm:$0xff]   ;;  %v1221_v5 = vld [vmem:[#allocation2 + $0x74] ss:$28 sps:$4 sm:$0xff]   ;;  %v1223_v7 = vld [vmem:[#allocation2 + $0xac] ss:$28 sps:$4 sm:$0xff]  }
  0x15   :  { %1079 = vmatpush3.bf16.msra.mxu1 %v1217_v1  ;;  %1059 = vmatpush3.bf16.msra.mxu0 %v1218_v2  ;;  %v1224_v8 = vld [vmem:[#allocation2 + $0xa8] ss:$28 sps:$4 sm:$0xff]   ;;  %v1226_v10 = vld [vmem:[#allocation2 + $0xe0] ss:$28 sps:$4 sm:$0xff]   ;;  %v1228_v12 = vld [vmem:[#allocation2 + $0x118] ss:$28 sps:$4 sm:$0xff]  }
  0x16   :  { %1080 = vmatprep.subr.bf16.mxu1 %v1308_v0  ;;  %1060 = vmatprep.subr.bf16.mxu0 %v1308_v0  ;;  %v1225_v9 = vld [vmem:[#allocation2 + $0xe4] ss:$28 sps:$4 sm:$0xff]   ;;  %v1227_v11 = vld [vmem:[#allocation2 + $0x11c] ss:$28 sps:$4 sm:$0xff]   ;;  %v1229_v13 = vld [vmem:[#allocation2 + $0x154] ss:$28 sps:$4 sm:$0xff]  }
  0x17   :  { %v1230_v14 = vld [vmem:[#allocation2 + $0x150] ss:$28 sps:$4 sm:$0xff]   ;;  %v26_v16 = vld [vmem:[%s1435_s0] sm:$0xff]  ;;  %v1235_v29 = vld [vmem:[#allocation2 + $0x78] ss:$28 sps:$4 sm:$0xff]   ;;  %vm413_vm2 = vcmask 64512  }
  0x18   :  { %v1231_v15 = vld [vmem:[#allocation2 + $0x18c] ss:$28 sps:$4 sm:$0xff]   ;;  %v1360_v18 = vpack.c.bf16 %v26_v16, %v26_v16  ;;  %v1234_v28 = vld [vmem:[#allocation2 + $0x40] ss:$28 sps:$4 sm:$0xff]   ;;  %v1239_v33 = vld [vmem:[#allocation2 + $0x158] ss:$28 sps:$4 sm:$0xff]  }
  0x19   :  { %1081 = vmatpush3.bf16.msra.mxu1 %v1219_v3  ;;  %1061 = vmatpush3.bf16.msra.mxu0 %v1220_v4  ;;  %v1232_v17 = vld [vmem:[#allocation2 + $0x188] ss:$28 sps:$4 sm:$0xff]   ;;  %v1236_v30 = vld [vmem:[#allocation2 + $0xb0] ss:$28 sps:$4 sm:$0xff]   ;;  %v1238_v32 = vld [vmem:[#allocation2 + $0x120] ss:$28 sps:$4 sm:$0xff]  }
  0x1a   :  { %1082 = vmatprep.subr.bf16.mxu1 %v1308_v0  ;;  %1062 = vmatprep.subr.bf16.mxu0 %v1308_v0  ;;  %v1233_v27 = vld [vmem:[#allocation2 + $0x8] ss:$28 sps:$4 sm:$0xff]   ;;  %v1240_v34 = vld [vmem:[#allocation2 + $0x190] ss:$28 sps:$4 sm:$0xff]   ;;  %v1243_v55 = vld [vmem:[#allocation2 + $0x80] ss:$28 sps:$4 sm:$0xff]  }
  0x1b   :  { %v1237_v31 = vld [vmem:[#allocation2 + $0xe8] ss:$28 sps:$4 sm:$0xff]   ;;  %v1241_v51 = vld [vmem:[#allocation2 + $0x10] ss:$28 sps:$4 sm:$0xff]   ;;  %v1244_v56 = vld [vmem:[#allocation2 + $0xb8] ss:$28 sps:$4 sm:$0xff]  }
  0x1c   :  { %v28_v35 = vld [vmem:[%s1435_s0 + $0x8] sm:$0xff]  ;;  %v1247_v59 = vld [vmem:[#allocation2 + $0x160] ss:$28 sps:$4 sm:$0xff]   ;;  %v1248_v60 = vld [vmem:[#allocation2 + $0x198] ss:$28 sps:$4 sm:$0xff]  }
  0x1d   :  { %1083 = vmatpush3.bf16.msra.mxu1 %v1221_v5  ;;  %1063 = vmatpush3.bf16.msra.mxu0 %v1222_v6  ;;  %vm411_vm1 = vcmp.gt.f32.partialorder %v28_v35, 0.0  ;;  %v1242_v54 = vld [vmem:[#allocation2 + $0x48] ss:$28 sps:$4 sm:$0xff]   ;;  %v1245_v57 = vld [vmem:[#allocation2 + $0xf0] ss:$28 sps:$4 sm:$0xff]  }
  0x1e   :  { %1084 = vmatprep.subr.bf16.mxu1 %v1308_v0  ;;  %1064 = vmatprep.subr.bf16.mxu0 %v1308_v0  ;;  %v1246_v58 = vld [vmem:[#allocation2 + $0x128] ss:$28 sps:$4 sm:$0xff]   ;;  %v1257_v61 = vld [vmem:[#allocation2 + $0x14] ss:$28 sps:$4 sm:$0xff]   ;;  %v1260_v1 = vld [vmem:[#allocation2 + $0xbc] ss:$28 sps:$4 sm:$0xff]  }
  0x1f   :  { %v1258_v62 = vld [vmem:[#allocation2 + $0x4c] ss:$28 sps:$4 sm:$0xff]   ;;  %v1259_v63 = vld [vmem:[#allocation2 + $0x84] ss:$28 sps:$4 sm:$0xff]   ;;  %v1261_v2 = vld [vmem:[#allocation2 + $0xf4] ss:$28 sps:$4 sm:$0xff]  }
  0x20   :  { %v1262_v3 = vld [vmem:[#allocation2 + $0x12c] ss:$28 sps:$4 sm:$0xff]   ;;  %v1263_v4 = vld [vmem:[#allocation2 + $0x164] ss:$28 sps:$4 sm:$0xff]   ;;  %v1264_v16 = vld [vmem:[#allocation2 + $0x19c] ss:$28 sps:$4 sm:$0xff]  }
  0x21   :  { %1085 = vmatpush3.bf16.msra.mxu1 %v1223_v7  ;;  %1065 = vmatpush3.bf16.msra.mxu0 %v1224_v8  ;;  %v1249_v6 = vld [vmem:[#allocation2 + $0xc] ss:$28 sps:$4 sm:$0xff]  }
  0x22   :  { %1086 = vmatprep.subr.bf16.mxu1 %v1308_v0  ;;  %1066 = vmatprep.subr.bf16.mxu0 %v1308_v0 }
  0x25   :  { %1087 = vmatpush3.bf16.msra.mxu1 %v1225_v9  ;;  %1067 = vmatpush3.bf16.msra.mxu0 %v1226_v10  ;;  %v1250_v9 = vld [vmem:[#allocation2 + $0x44] ss:$28 sps:$4 sm:$0xff]   ;;  %v1251_v10 = vld [vmem:[#allocation2 + $0x7c] ss:$28 sps:$4 sm:$0xff]  }
  0x26   :  { %1088 = vmatprep.subr.bf16.mxu1 %v1308_v0  ;;  %1068 = vmatprep.subr.bf16.mxu0 %v1308_v0 }
  0x29   :  { %1089 = vmatpush3.bf16.msra.mxu1 %v1227_v11  ;;  %1069 = vmatpush3.bf16.msra.mxu0 %v1228_v12  ;;  %v1252_v11 = vld [vmem:[#allocation2 + $0xb4] ss:$28 sps:$4 sm:$0xff]   ;;  %v1253_v12 = vld [vmem:[#allocation2 + $0xec] ss:$28 sps:$4 sm:$0xff]  }
  0x2a   :  { %1090 = vmatprep.subr.bf16.mxu1 %v1308_v0  ;;  %1070 = vmatprep.subr.bf16.mxu0 %v1308_v0 }
  0x2d   :  { %1091 = vmatpush3.bf16.msra.mxu1 %v1229_v13  ;;  %1071 = vmatpush3.bf16.msra.mxu0 %v1230_v14  ;;  %v1254_v13 = vld [vmem:[#allocation2 + $0x124] ss:$28 sps:$4 sm:$0xff]   ;;  %v1255_v14 = vld [vmem:[#allocation2 + $0x15c] ss:$28 sps:$4 sm:$0xff]  }
  0x2e   :  { %1092 = vmatprep.subr.bf16.mxu1 %v1308_v0  ;;  %1072 = vmatprep.subr.bf16.mxu0 %v1308_v0 }
  0x31   :  { %1093 = vmatpush3.bf16.msra.mxu1 %v1231_v15  ;;  %1073 = vmatpush3.bf16.msra.mxu0 %v1232_v17  ;;  %v1256_v15 = vld [vmem:[#allocation2 + $0x194] ss:$28 sps:$4 sm:$0xff]  }
  0x32   :  { %1118 = vmatprep.subr.mxu1 %v1308_v0  ;;  %1098 = vmatprep.subr.bf16.mxu0 %v1308_v0 }
  0x34   :  { %1095 = vmatmul.mubr.bf16.vlgmr.msra.gmra.mrb[0].mxu1 %v1360_v18  ;;  %1075 = vmatmul.mubr.bf16.vlgmr.msra.gmra.mrb[0].mxu0 %v1360_v18 }
  0x35   :  { %1120 = vmatprep.mubr.msk.f32.mxu1 %vm1309_vm0, %v1308_v0  ;;  %1114 = vmatprep.mubr.msk.bf16.mxu0 %vm1309_vm0, %v1308_v0 }
  0x36   :  { %1099 = vmatpush3.bf16.msra.mxu0 %v1233_v27 }
  0x37   :  { %1100 = vmatprep.subr.bf16.mxu0 %v1308_v0 }
  0x3a   :  { %1101 = vmatpush3.bf16.msra.mxu0 %v1234_v28 }
  0x3b   :  { %1102 = vmatprep.subr.bf16.mxu0 %v1308_v0 }
  0x3e   :  { %1103 = vmatpush3.bf16.msra.mxu0 %v1235_v29 }
  0x3f   :  { %1104 = vmatprep.subr.bf16.mxu0 %v1308_v0 }
  0x42   :  { %1105 = vmatpush3.bf16.msra.mxu0 %v1236_v30 }
  0x43   :  { %1106 = vmatprep.subr.bf16.mxu0 %v1308_v0 }
  0x46   :  { %1107 = vmatpush3.bf16.msra.mxu0 %v1237_v31  ;;  %v1269_v31 = vld [vmem:[#allocation2 + $0xf8] ss:$28 sps:$4 sm:$0xff]  }
  0x47   :  { %1108 = vmatprep.subr.bf16.mxu0 %v1308_v0 }
  0x4a   :  { %1109 = vmatpush3.bf16.msra.mxu0 %v1238_v32  ;;  %v1270_v32 = vld [vmem:[#allocation2 + $0x130] ss:$28 sps:$4 sm:$0xff]  }
  0x4b   :  { %1110 = vmatprep.subr.bf16.mxu0 %v1308_v0 }
  0x4e   :  { %1111 = vmatpush3.bf16.msra.mxu0 %v1239_v33  ;;  %v1271_v33 = vld [vmem:[#allocation2 + $0x168] ss:$28 sps:$4 sm:$0xff]  }
  0x4f   :  { %1112 = vmatprep.subr.bf16.mxu0 %v1308_v0 }
  0x52   :  { %1113 = vmatpush3.bf16.msra.mxu0 %v1240_v34  ;;  %v1272_v34 = vld [vmem:[#allocation2 + $0x1a0] ss:$28 sps:$4 sm:$0xff]  }
  0x53   :  { %1168 = vmatprep.subr.bf16.mxu0 %v1308_v0 }
  0x55   :  { %1115 = vmatmul.mubr.bf16.vlgmr.msra.gmra.mrb[4].mxu0 %v1360_v18 }
  0x56   :  { %1184 = vmatprep.mubr.msk.bf16.mxu0 %vm1309_vm0, %v1308_v0  ;;  %1169 = vmatpush3.bf16.msra.mxu0 %v1257_v61 }
  0x57   :  { %1170 = vmatprep.subr.bf16.mxu0 %v1308_v0 }
  0x5a   :  { %1171 = vmatpush3.bf16.msra.mxu0 %v1258_v62 }
  0x5b   :  { %1172 = vmatprep.subr.bf16.mxu0 %v1308_v0 }
  0x5e   :  { %1173 = vmatpush3.bf16.msra.mxu0 %v1259_v63 }
  0x5f   :  { %1174 = vmatprep.subr.bf16.mxu0 %v1308_v0 }
  0x62   :  { %1175 = vmatpush3.bf16.msra.mxu0 %v1260_v1 }
  0x63   :  { %1176 = vmatprep.subr.bf16.mxu0 %v1308_v0 }
  0x66   :  { %1177 = vmatpush3.bf16.msra.mxu0 %v1261_v2 }
  0x67   :  { %1178 = vmatprep.subr.bf16.mxu0 %v1308_v0 }
  0x6a   :  { %1179 = vmatpush3.bf16.msra.mxu0 %v1262_v3 }
  0x6b   :  { %1180 = vmatprep.subr.bf16.mxu0 %v1308_v0 }
  0x6e   :  { %1181 = vmatpush3.bf16.msra.mxu0 %v1263_v4 }
  0x6f   :  { %1182 = vmatprep.subr.bf16.mxu0 %v1308_v0 }
  0x72   :  { %1183 = vmatpush3.bf16.msra.mxu0 %v1264_v16 }
  0x73   :  { %1188 = vmatprep.subr.bf16.mxu0 %v1308_v0 }
 0x107   :  { %v231_v19 = vpop.f32.mrb[0].mxu1  ;;  %v127_v21 = vpop.f32.mrb[0].mxu0 }
 0x108   :  { %v1096_v20 = vpop.f32.mrb[1].mxu1  ;;  %1119 = vmatpush3.xpose.msra.mxu1 %v231_v19  ;;  %v1076_v23 = vpop.f32.mrb[1].mxu0 }
 0x109   :  { %v234_v22 = vpop.f32.mrb[2].mxu1  ;;  %1123 = vmatprep.subr.mxu1 %v1308_v0  ;;  %v130_v25 = vpop.f32.mrb[2].mxu0 }
 0x10a   :  { %v1097_v24 = vpop.f32.mrb[3].mxu1  ;;  %v1077_v26 = vpop.f32.mrb[3].mxu0  ;;  %v1266_v25 = vld [vmem:[#allocation2 + $0x50] ss:$28 sps:$4 sm:$0xff]  }
 0x10b   :  { %1121 = vmatmul.mubr.f32.vlgmr.msra.gmra.mrb[4].mxu1 %v127_v21  ;;  %v1265_v24 = vld [vmem:[#allocation2 + $0x18] ss:$28 sps:$4 sm:$0xff]   ;;  %v1268_v26 = vld [vmem:[#allocation2 + $0xc0] ss:$28 sps:$4 sm:$0xff]  }
 0x10c   :  { %1125 = vmatprep.mubr.msk.f32.mxu1 %vm1309_vm0, %v1308_v0 }
 0x128   :  { %v335_v45 = vpop.f32.mrb[4].mxu0 }
 0x129   :  { %v1116_v46 = vpop.f32.mrb[5].mxu0  ;;  %1124 = vmatpush3.msra.mxu1 %v335_v45 }
 0x12a   :  { %v338_v47 = vpop.f32.mrb[6].mxu0  ;;  %1128 = vmatprep.subr.bf16.mxu1 %v1308_v0 }
 0x12b   :  { %v1117_v48 = vpop.f32.mrb[7].mxu0 }
 0x1de   :  { %v407_v36 = vpop.f32.mrb[4].mxu1 }
 0x1df   :  { %v412_v37 = vsel %vm411_vm1, %v407_v36, -1e+09  ;;  %v1122_v38 = vpop.f32.mrb[5].mxu1 }
 0x1e0   :  { %v414_v39 = vsel %vm413_vm2, %v412_v37, -inf }
 0x1e1   :  { %415 = vmax.xlane.f32.xlu0 %v414_v39 }
 0x26e   :  { %v416_v40 = vpop.xlane.xlu0 %415 }
 0x26f   :  { %v417_v41 = vsub.f32 %v412_v37, %v416_v40 }
 0x271   :  { %v418_v42 = vmul.f32 1.442695, %v417_v41 }
 0x273   :  { %1273 = vpow2.f32 %v418_v42 }
 0x27d   :  { %v1274_v43 = vpop.eup %1273 }
 0x27e   :  { %v420_v44 = vsel %vm413_vm2, %v1274_v43, 0.0 }
 0x27f   :  { %421 = vadd.xlane.f32.xlu0 %v420_v44 }
 0x30c   :  { %v422_v49 = vpop.xlane.xlu0 %421 }
 0x30d   :  { %1275 = vrcp.f32 %v422_v49 }
 0x317   :  { %v1276_v50 = vpop.eup %1275 }
 0x318   :  { %v424_v52 = vmul.f32 %v1276_v50, %v1274_v43 }
 0x31a   :  { %v927_v53 = vsel %vm413_vm2, %v424_v52, 0.0  ;;  %1126 = vmatmul.mubr.msk.f32.vlgmr.msra.gmra.mrb[6].mxu1 %vm413_vm2, %v424_v52 }
 0x31b   :  { %928 = vst [vmem:[%s1437_s2 + $0x8] sm:$0xff] %v927_v53  ;;  %1129 = vmatpush3.bf16.msra.mxu1 %v1241_v51  ;;  %1144 = vmatprep.mubr.msk.bf16.mxu1 %vm1309_vm0, %v1308_v0 }
 0x31c   :  { %1130 = vmatprep.subr.bf16.mxu1 %v1308_v0 }
 0x31f   :  { %1131 = vmatpush3.bf16.msra.mxu1 %v1242_v54 }
 0x320   :  { %1132 = vmatprep.subr.bf16.mxu1 %v1308_v0 }
 0x323   :  { %1133 = vmatpush3.bf16.msra.mxu1 %v1243_v55 }
 0x324   :  { %1134 = vmatprep.subr.bf16.mxu1 %v1308_v0 }
 0x327   :  { %1135 = vmatpush3.bf16.msra.mxu1 %v1244_v56 }
 0x328   :  { %1136 = vmatprep.subr.bf16.mxu1 %v1308_v0 }
 0x32b   :  { %1137 = vmatpush3.bf16.msra.mxu1 %v1245_v57 }
 0x32c   :  { %1138 = vmatprep.subr.bf16.mxu1 %v1308_v0 }
 0x32f   :  { %1139 = vmatpush3.bf16.msra.mxu1 %v1246_v58 }
 0x330   :  { %1140 = vmatprep.subr.bf16.mxu1 %v1308_v0 }
 0x333   :  { %1141 = vmatpush3.bf16.msra.mxu1 %v1247_v59 }
 0x334   :  { %1142 = vmatprep.subr.bf16.mxu1 %v1308_v0 }
 0x337   :  { %1143 = vmatpush3.bf16.msra.mxu1 %v1248_v60 }
 0x338   :  { %1148 = vmatprep.subr.bf16.mxu1 %v1308_v0 }
 0x3ed   :  { %v494_v5 = vpop.f32.mrb[6].mxu1 }
 0x3ee   :  { %v514_v7 = vpack.c.bf16 %v494_v5, %v494_v5  ;;  %v1127_v8 = vpop.f32.mrb[7].mxu1 }
 0x3f0   :  { %1145 = vmatmul.mubr.bf16.vlgmr.msra.gmra.mrb[8].mxu1 %v514_v7 }
 0x3f1   :  { %1149 = vmatpush3.bf16.msra.mxu1 %v1249_v6  ;;  %1164 = vmatprep.mubr.msk.bf16.mxu1 %vm1309_vm0, %v1308_v0 }
 0x3f2   :  { %1150 = vmatprep.subr.bf16.mxu1 %v1308_v0 }
 0x3f5   :  { %1151 = vmatpush3.bf16.msra.mxu1 %v1250_v9 }
 0x3f6   :  { %1152 = vmatprep.subr.bf16.mxu1 %v1308_v0 }
 0x3f9   :  { %1153 = vmatpush3.bf16.msra.mxu1 %v1251_v10 }
 0x3fa   :  { %1154 = vmatprep.subr.bf16.mxu1 %v1308_v0 }
 0x3fd   :  { %1155 = vmatpush3.bf16.msra.mxu1 %v1252_v11 }
 0x3fe   :  { %1156 = vmatprep.subr.bf16.mxu1 %v1308_v0 }
 0x401   :  { %1157 = vmatpush3.bf16.msra.mxu1 %v1253_v12 }
 0x402   :  { %1158 = vmatprep.subr.bf16.mxu1 %v1308_v0 }
 0x405   :  { %1159 = vmatpush3.bf16.msra.mxu1 %v1254_v13 }
 0x406   :  { %1160 = vmatprep.subr.bf16.mxu1 %v1308_v0 }
 0x409   :  { %1161 = vmatpush3.bf16.msra.mxu1 %v1255_v14 }
 0x40a   :  { %1162 = vmatprep.subr.bf16.mxu1 %v1308_v0 }
 0x40d   :  { %1163 = vmatpush3.bf16.msra.mxu1 %v1256_v15 }
 0x410   :  { %1165 = vmatmul.mubr.bf16.vlgmr.msra.gmra.mrb[8].mxu1 %v1360_v18  ;;  %v1267_v18 = vld [vmem:[#allocation2 + $0x88] ss:$28 sps:$4 sm:$0xff]  }
 0x4e3   :  { %v701_v17 = vpop.f32.mrb[8].mxu1 }
 0x4e4   :  { %v707_v19 = vmax.f32 %v701_v17, 0.0  ;;  %v1166_v20 = vpop.f32.mrb[9].mxu1 }
 0x4e5   :  { %v704_v21 = vpop.f32.mrb[10].mxu1 }
 0x4e6   :  { %v708_v22 = vpack.c.bf16 %v707_v19, %v707_v19  ;;  %v1167_v23 = vpop.f32.mrb[11].mxu1 }
 0x4e8   :  { %1185 = vmatmul.mubr.bf16.vlgmr.msra.gmra.mrb[8].mxu0 %v708_v22 }
 0x4e9   :  { %1204 = vmatprep.mubr.msk.bf16.mxu0 %vm1309_vm0, %v1308_v0  ;;  %1189 = vmatpush3.bf16.msra.mxu0 %v1265_v24 }
 0x4ea   :  { %1190 = vmatprep.subr.bf16.mxu0 %v1308_v0 }
 0x4ed   :  { %1191 = vmatpush3.bf16.msra.mxu0 %v1266_v25 }
 0x4ee   :  { %1192 = vmatprep.subr.bf16.mxu0 %v1308_v0 }
 0x4f1   :  { %1193 = vmatpush3.bf16.msra.mxu0 %v1267_v18 }
 0x4f2   :  { %1194 = vmatprep.subr.bf16.mxu0 %v1308_v0 }
 0x4f5   :  { %1195 = vmatpush3.bf16.msra.mxu0 %v1268_v26 }
 0x4f6   :  { %1196 = vmatprep.subr.bf16.mxu0 %v1308_v0 }
 0x4f9   :  { %1197 = vmatpush3.bf16.msra.mxu0 %v1269_v31 }
 0x4fa   :  { %1198 = vmatprep.subr.bf16.mxu0 %v1308_v0 }
 0x4fd   :  { %1199 = vmatpush3.bf16.msra.mxu0 %v1270_v32 }
 0x4fe   :  { %1200 = vmatprep.subr.bf16.mxu0 %v1308_v0 }
 0x501   :  { %1201 = vmatpush3.bf16.msra.mxu0 %v1271_v33 }
 0x502   :  { %1202 = vmatprep.subr.bf16.mxu0 %v1308_v0 }
 0x505   :  { %1203 = vmatpush3.bf16.msra.mxu0 %v1272_v34 }
 0x5bb   :  { %v807_v27 = vpop.f32.mrb[8].mxu0 }
 0x5bc   :  { %813 = vmax.xlane.f32.xlu1 %v807_v27  ;;  %v1186_v28 = vpop.f32.mrb[9].mxu0 }
 0x5bd   :  { %v810_v29 = vpop.f32.mrb[10].mxu0 }
 0x5be   :  { %v1187_v30 = vpop.f32.mrb[11].mxu0 }
 0x649   :  { %v814_v35 = vpop.xlane.xlu1 %813 }
 0x64a   :  { %v815_v36 = vsub.f32 %v807_v27, %v814_v35 }
 0x64c   :  { %v816_v37 = vmul.f32 1.442695, %v815_v36 }
 0x64e   :  { %1277 = vpow2.f32 %v816_v37 }
 0x658   :  { %v1278_v38 = vpop.eup %1277 }
 0x659   :  { %v818_v39 = vpack.c.bf16 %v1278_v38, %v1278_v38 }
 0x65b   :  { %1205 = vmatmul.mubr.bf16.vlgmr.msra.gmra.mrb[12].mxu0 %v818_v39 }
 0x72e   :  { %v917_v40 = vpop.f32.mrb[12].mxu0 }
 0x72f   :  { %1279 = vrcp.f32 %v917_v40  ;;  %v1206_v41 = vpop.f32.mrb[13].mxu0 }
 0x730   :  { %v920_v42 = vpop.f32.mrb[14].mxu0 }
 0x731   :  { %v1207_v43 = vpop.f32.mrb[15].mxu0 }
 0x739   :  { %v1280_v44 = vpop.eup %1279 }
 0x73a   :  { %v924_v45 = vmul.f32 %v1280_v44, %v1278_v38 }
 0x73c   :  { %v925_v46 = vmax.f32 %v924_v45, 0.0001 }
 0x73e   :  { %926 = vst [vmem:[%s1437_s2] sm:$0xff] %v925_v46 }
 0x73f   :  { %933 = vsyncpa [#allocation3], 1 }

</bundles_post_ra>
